<compile_context>
chip_gen: v7x
topology: tpu7x:2x2x1
jax: 0.10.0
libtpu: 0.0.40
codegen_flags: <defaults>
</compile_context>

<pallas_src>
import jax
import jax.numpy as jnp
from jax.experimental import pallas as pl
from jax.experimental.pallas import tpu as pltpu


# ---------------------------------------------------------------------------
# Phase 1: tiled global sum (squeeze).  grid = (C tiles, HW tiles); HW is the
# trailing reduction axis; the (B, c_tile) f32 output block keeps the same
# block index across HW steps, so it stays resident in VMEM as an accumulator.
# ---------------------------------------------------------------------------
def _pool_sum_kernel(x_ref, sum_ref):
    @pl.when(pl.program_id(1) == 0)
    def _():
        sum_ref[...] = jnp.zeros_like(sum_ref)

    # Partial sum over this spatial tile, accumulated in f32.
    sum_ref[...] += jnp.sum(x_ref[...].astype(jnp.float32), axis=-1)


# ---------------------------------------------------------------------------
# Phase 2: tiled per-(batch, channel) scaling (apply the excite gate).
# Fully parallel grid; the (B, c_tile) gate slice rides along as a tiny input.
# ---------------------------------------------------------------------------
def _scale_kernel(g_ref, x_ref, o_ref):
    o_ref[...] = x_ref[...] * g_ref[...][:, :, None]


def _pick_tile(dim, multiple, max_tile):
    """Largest divisor of `dim` that is a multiple of `multiple` and <= max_tile.

    Falls back to the full dimension (always layout-legal) if none exists.
    """
    best = None
    t = multiple
    while t <= min(dim, max_tile):
        if dim % t == 0:
            best = t
        t += multiple
    return best if best is not None else dim


def squeeze_excite(x, w1, w2, *, max_hw_tile=2048, target_tile_bytes=3 << 20):
    """Squeeze-and-Excitation forward.

    x : (B, C, H, W) NCHW.
    w1: (C//r, C)  torch nn.Linear(C, C//r, bias=False).weight layout.
    w2: (C, C//r)  torch nn.Linear(C//r, C, bias=False).weight layout.
    """
    b, c, h, w = x.shape
    hw = h * w
    x_flat = x.reshape(b, c, hw)
    itemsize = jnp.dtype(x.dtype).itemsize

    # --- tile selection: lane-dense spatial tiles, channel tiles multiple of 128
    #     (so the (B, c_tile) gate/sum blocks also satisfy the (8,128) rule),
    #     sized against a conservative per-block byte budget so double-buffered
    #     blocks fit every generation's scoped-VMEM default. ---
    hw_tile = _pick_tile(hw, 128, max_hw_tile)
    c_budget = max(128, target_tile_bytes // max(1, itemsize * b * hw_tile))
    c_tile = _pick_tile(c, 128, min(c, c_budget))
    n_c, n_hw = c // c_tile, hw // hw_tile

    # ---------------- phase 1: global sum over H*W ----------------
    sums = pl.pallas_call(
        _pool_sum_kernel,
        out_shape=jax.ShapeDtypeStruct((b, c), jnp.float32),
        grid_spec=pltpu.PrefetchScalarGridSpec(
            num_scalar_prefetch=0,
            grid=(n_c, n_hw),
            in_specs=[
                pl.BlockSpec((b, c_tile, hw_tile), lambda ci, hi: (0, ci, hi)),
            ],
            out_specs=pl.BlockSpec((b, c_tile), lambda ci, hi: (0, ci)),
        ),
        compiler_params=pltpu.CompilerParams(
            dimension_semantics=("parallel", "arbitrary"),
        ),
    )(x_flat)

    # ------- excite MLP: tiny (B,C) matmuls, run ONCE, in plain JAX -------
    mean = sums * (1.0 / float(hw))                                     # (B, C) f32
    hid = jnp.maximum(
        jnp.dot(mean, w1.T.astype(jnp.float32),
                preferred_element_type=jnp.float32), 0.0)               # (B, C//r)
    logits = jnp.dot(hid, w2.T.astype(jnp.float32),
                     preferred_element_type=jnp.float32)                # (B, C)
    gate = (1.0 / (1.0 + jnp.exp(-logits))).astype(x.dtype)             # (B, C)

    # ---------------- phase 2: per-(batch, channel) scaling ----------------
    out_flat = pl.pallas_call(
        _scale_kernel,
        out_shape=jax.ShapeDtypeStruct((b, c, hw), x.dtype),
        grid_spec=pltpu.PrefetchScalarGridSpec(
            num_scalar_prefetch=0,
            grid=(n_c, n_hw),
            in_specs=[
                pl.BlockSpec((b, c_tile), lambda ci, hi: (0, ci)),
                pl.BlockSpec((b, c_tile, hw_tile), lambda ci, hi: (0, ci, hi)),
            ],
            out_specs=pl.BlockSpec((b, c_tile, hw_tile), lambda ci, hi: (0, ci, hi)),
        ),
        compiler_params=pltpu.CompilerParams(
            dimension_semantics=("parallel", "parallel"),
        ),
    )(gate, x_flat)

    return out_flat.reshape(b, c, h, w)


def _reference(x, w1, w2):
    # Pure-JAX reference mirroring the PyTorch module.
    y = jnp.mean(x.astype(jnp.float32), axis=(2, 3))                    # (B, C)
    y = jnp.maximum(y @ w1.T.astype(jnp.float32), 0.0)                  # (B, C//r)
    y = 1.0 / (1.0 + jnp.exp(-(y @ w2.T.astype(jnp.float32))))          # (B, C)
    return (x.astype(jnp.float32) * y[:, :, None, None]).astype(x.dtype)


if __name__ == "__main__":
    # Small shapes consistent with the module: B=2, C=4, H=W=16, reduction=2.
    B, C, H, W = 2, 4, 16, 16
    reduction = 2
    Cr = C // reduction

    key = jax.random.PRNGKey(0)
    kx, k1, k2 = jax.random.split(key, 3)

    x = jax.random.normal(kx, (B, C, H, W), dtype=jnp.float32)
    # Weights in torch nn.Linear layout (out_features, in_features).
    w1 = jax.random.normal(k1, (Cr, C), dtype=jnp.float32) * 0.5   # Linear(C -> C//r)
    w2 = jax.random.normal(k2, (C, Cr), dtype=jnp.float32) * 0.5   # Linear(C//r -> C)

    out = squeeze_excite(x, w1, w2)
    out = jax.block_until_ready(out)

    ref = _reference(x, w1, w2)
    assert out.shape == (B, C, H, W)
    assert jnp.allclose(out, ref, atol=1e-5, rtol=1e-5), "mismatch vs reference"

    print("KERNEL_OK")
</pallas_src>

<mosaic_0001>
module attributes {stable_mosaic.version = 11 : i64} {
  func.func @_pool_sum_kernel(%arg0: i32, %arg1: i32, %arg2: memref<2x4x256xf32, #tpu.memory_space<vmem>>, %arg3: memref<2x4xf32, #tpu.memory_space<vmem>>) attributes {dimension_semantics = [#tpu.dimension_semantics<parallel>, #tpu.dimension_semantics<arbitrary>], iteration_bounds = array<i64: 1, 1>, scalar_prefetch = 0 : i64, scratch_operands = 0 : i64, tpu.core_type = #tpu.core_type<tc>, window_params = [{transform_indices = @transform_0, window_bounds = array<i64: 2, 4, 256>}, {transform_indices = @transform_1, window_bounds = array<i64: 2, 4>}]} {
    %c0_i32 = arith.constant 0 : i32
    %0 = arith.cmpi eq, %arg1, %c0_i32 : i32
    %1 = arith.extui %0 : i1 to i32
    %c0_i32_0 = arith.constant 0 : i32
    %2 = arith.cmpi ne, %1, %c0_i32_0 : i32
    scf.if %2 {
      %cst_7 = arith.constant 0.000000e+00 : f32
      %8 = vector.broadcast %cst_7 : f32 to vector<2x4xf32>
      %c0_8 = arith.constant 0 : index
      %c0_9 = arith.constant 0 : index
      %9 = vector.load %arg3[%c0_8, %c0_9] : memref<2x4xf32, #tpu.memory_space<vmem>>, vector<2x4xf32>
      tpu.vector_store %arg3[%c0_8, %c0_9], %8 {strides = array<i32>} : memref<2x4xf32, #tpu.memory_space<vmem>>, vector<2x4xf32>,
    } else {
    }
    %c0 = arith.constant 0 : index
    %c0_1 = arith.constant 0 : index
    %3 = vector.load %arg3[%c0, %c0_1] : memref<2x4xf32, #tpu.memory_space<vmem>>, vector<2x4xf32>
    %c0_2 = arith.constant 0 : index
    %c0_3 = arith.constant 0 : index
    %c0_4 = arith.constant 0 : index
    %4 = vector.load %arg2[%c0_2, %c0_3, %c0_4] : memref<2x4x256xf32, #tpu.memory_space<vmem>>, vector<2x4x256xf32>
    %cst = arith.constant dense<0.000000e+00> : vector<2x4xf32>
    %5 = vector.multi_reduction <add>, %4, %cst [2] : vector<2x4x256xf32> to vector<2x4xf32>
    %6 = arith.addf %3, %5 : vector<2x4xf32>
    %c0_5 = arith.constant 0 : index
    %c0_6 = arith.constant 0 : index
    %7 = vector.load %arg3[%c0_5, %c0_6] : memref<2x4xf32, #tpu.memory_space<vmem>>, vector<2x4xf32>
    tpu.vector_store %arg3[%c0_5, %c0_6], %6 {strides = array<i32>} : memref<2x4xf32, #tpu.memory_space<vmem>>, vector<2x4xf32>,
    return
  }
  func.func @transform_0(%arg0: i32, %arg1: i32) -> (i32, i32, i32) {
    %c0_i32 = arith.constant 0 : i32
    %c0_i32_0 = arith.constant 0 : i32
    return %c0_i32, %arg0, %arg1 : i32, i32, i32
  }
  func.func @transform_1(%arg0: i32, %arg1: i32) -> (i32, i32) {
    %c0_i32 = arith.constant 0 : i32
    %c0_i32_0 = arith.constant 0 : i32
    return %c0_i32, %arg0 : i32, i32
  }
}

</mosaic_0001>

<bundles_post_ra>
// kernel: tpu_custom_call.1
= control target key start
LH: loop header
LB: loop body
LE: loop exit
PB: predicated region body
PF: predicated region fallthrough
CT: control target
= control target key end

     0   :  { %6 = vsyncpa [#allocation3], 0  ;;  %s178_s0 = inlined_call_operand.hbm [shape: f32[2,4,256], index: 0, kind: input, shape index: {}]   ;;  %s179_s1 = inlined_call_operand.hbm [shape: f32[2,4], index: 1, kind: output, shape index: {}]  }
   0x1   :  { %7 = vsyncpa [#allocation4], 0  ;;  %s137_s6 = smov [#allocation2]   ;;  %s89_s10 = scalar_lea.hbm %s178_s0, 256 }
   0x2   :  { %s13_s7 = sshll.u32 %s137_s6, 4  ;;  %p90_p0 = scmp.ne.s32.totalorder %s178_s0, %s89_s10  ;;  %s14_s7 = int_to_ptr.vmem [resolvable:$true] %s13_s7 }
   0x3   :  { %p93_p1 = scmp.lt.u32.totalorder %s89_s10, %s178_s0 }
   0x5   :  { %p95_p2 = pnand %p93_p1, %p90_p0 }
   0x7   :  { %98 = shalt.err (!%p95_p2)
}
   0x8   :  { %s99_s15 = scalar_lea.vmem %s14_s7, 256  ;;  %p104_p4 = scmp.lt.s32.totalorder %s14_s7, %s14_s7 }
   0x9   :  { %p100_p3 = scmp.ne.s32.totalorder %s14_s7, %s99_s15  ;;  %p105_p5 = scmp.lt.s32.totalorder %s99_s15, %s99_s15 }
   0xb   :  { %p106_p6 = por %p105_p5, %p104_p4 }
   0xd   :  { %p107_p7 = pnand %p106_p6, %p100_p3 }
   0xf   :  { %110 = shalt.err (!%p107_p7)
}
  0x10   :  { %s138_s16 = smov 128   ;;  %s139_s17 = smov 8  }
  0x11   :  { %19 = dma.hbm_to_vmem [thread:$0]  %s178_s0, 256, %s14_s7, [#allocation3], %s138_s16, %s138_s16, %s139_s17  }
  0x12   :  { %133 = dma.done.wait [#allocation3], 256  }
  0x13   :  { %134 = vsyncadd [#allocation3], 4294967040  ;;  %vm27_vm0 = vcmask 25600   ;;  %v140_v0 = vmov 0.0   ;;  %vm38_vm1 = vcmask 1043456   ;;  %v30_v1 = vld [vmem:[#allocation2] sm:$0xff]  ;;  %v51_v11 = vlaneseq }
  0x14   :  { %28 = vst.msk [vmem:[#allocation5] sm:$0x3] %vm27_vm0, %v140_v0  ;;  %v31_v2 = vld [vmem:[#allocation2 + $0x8] sm:$0xff]  ;;  %v34_v3 = vcombine.high %v30_v1, %v30_v1  ;;  %v39_v4 = vsel %vm38_vm1, %v30_v1, 0.0  ;;  %vm61_vm2 = vcmask 1041409   ;;  %s141_s0 = smov [#allocation5]  }
  0x15   :  { %v35_v5 = vcombine.high %v31_v2, %v31_v2  ;;  %v44_v7 = vsel %vm38_vm1, %v31_v2, 0.0  ;;  %v52_v12 = vand.u32 127, %v51_v11  ;;  %v54_v13 = vshrl.u32 %v51_v11, 7  ;;  %s73_s20 = sshll.u32 %s141_s0, 4  ;;  %s74_s20 = int_to_ptr.vmem [resolvable:$true] %s73_s20 }
  0x16   :  { %v40_v6 = vsel %vm38_vm1, %v34_v3, 0.0  ;;  %s111_s21 = scalar_lea.vmem %s74_s20, 32  ;;  %p116_p9 = scmp.lt.s32.totalorder %s74_s20, %s74_s20 }
  0x17   :  { %v45_v8 = vsel %vm38_vm1, %v35_v5, 0.0  ;;  %v41_v9 = vadd.f32 %v40_v6, %v39_v4  ;;  %v55_v15 = vsub.s32 %v52_v12, %v54_v13  ;;  %p112_p8 = scmp.ne.s32.totalorder %s74_s20, %s111_s21  ;;  %p117_p10 = scmp.lt.s32.totalorder %s111_s21, %s111_s21 }
  0x18   :  { %v46_v10 = vadd.f32 %v45_v8, %v44_v7 }
  0x19   :  { %42 = vadd.xlane.f32.xlu0 %v41_v9  ;;  %p118_p11 = por %p117_p10, %p116_p9 }
  0x1b   :  { %v29_v18 = vld [vmem:[#allocation5] sm:$0x3]  ;;  %p119_p12 = pnand %p118_p11, %p112_p8 }
  0x1d   :  { %47 = vadd.xlane.f32.xlu0 %v46_v10 }
  0xa6   :  { %v43_v14 = vpop.xlane.xlu0 %42 }
  0xa7   :  { %v56_v17 = vrot.slane %v43_v14, %v55_v15 }
  0xaa   :  { %v48_v16 = vpop.xlane.xlu0 %47 }
  0xab   :  { %v60_v19 = vrot.slane %v48_v16, %v55_v15 }
  0xad   :  { %v62_v20 = vsel %vm61_vm2, %v60_v19, %v56_v17 }
  0xae   :  { %v64_v21 = vadd.f32 %v62_v20, %v29_v18 }
  0xb0   :  { %66 = vst.msk [vmem:[#allocation5] sm:$0x3] %vm27_vm0, %v64_v21 }
  0xb1   :  { %122 = shalt.err (!%p119_p12)
}
  0xb2   :  { %s123_s24 = scalar_lea.hbm %s179_s1, 32 }
  0xb3   :  { %p124_p13 = scmp.ne.s32.totalorder %s179_s1, %s123_s24  ;;  %p127_p0 = scmp.lt.u32.totalorder %s123_s24, %s179_s1 }
  0xb5   :  { %p129_p1 = pnand %p127_p0, %p124_p13 }
  0xb7   :  { %132 = shalt.err (!%p129_p1)
}
  0xb8   :  { %76 = dma.vmem_to_hbm [thread:$0]  %s74_s20, 32, %s179_s1, [#allocation4]  }
  0xb9   :  { %135 = dma.done.wait [#allocation4], 32  }
  0xba   :  { %136 = vsyncadd [#allocation4], 4294967264 }
  0xbb   :  { %80 = vsyncpa [#allocation3], 1 }
  0xbc   :  { %81 = vsyncpa [#allocation4], 1 }

</bundles_post_ra>
